<compile_context>
chip_gen: v7x
topology: tpu7x:2x2x1
jax: 0.10.0
libtpu: 0.0.40
codegen_flags: <defaults>
</compile_context>

<pallas_src>
import jax
import jax.numpy as jnp
from jax.experimental import pallas as pl
from jax.experimental.pallas import tpu as pltpu  # noqa: F401  (TPU backend)

LANE = 128            # padded lane width used everywhere
OUT_DIM = 2           # real number of classes
NEG_BIG = -1e30       # baked into padded softmax lanes of b2

# Row layout of the packed bf16 weight slab (W_ROWS, LANE).
W0_ROW, W1_ROW, W2_ROW = 0, 128, 256
W_ROWS = 384
# f32 bias slab (B_ROWS, LANE): row 0 = b0, row 1 = b1, row 2 = b2 (+mask).
B_ROWS = 8


def mlp_kernel(x_ref, w_ref, b_ref, o_ref):
    # x_ref: (B, 128) bf16, cols >= 20 are zero.
    # w_ref: (384, 128) bf16 zero-padded weight slab.
    # b_ref: (8, 128) f32 biases; b2 row has lanes >= OUT_DIM set to -1e30.
    xb = x_ref[...]
    w0 = w_ref[W0_ROW:W0_ROW + LANE, :]
    w1 = w_ref[W1_ROW:W1_ROW + LANE, :]
    w2 = w_ref[W2_ROW:W2_ROW + LANE, :]
    b0 = b_ref[0:1, :]
    b1 = b_ref[1:2, :]
    b2 = b_ref[2:3, :]

    # dense0 + relu  (bf16 MXU matmul, f32 accumulate, f32 bias add)
    h0 = jnp.dot(xb, w0, preferred_element_type=jnp.float32) + b0
    h0 = jnp.maximum(h0, 0.0)

    # dropout(0.5): identity at inference time.
    # TODO(synk): training-mode dropout (Bernoulli mask + 2x scale) not emitted;
    # would use pltpu.prng_seed + pltpu.stateful_bernoulli if needed.

    # dense1 + relu
    h1 = jnp.dot(h0.astype(jnp.bfloat16), w1,
                 preferred_element_type=jnp.float32) + b1
    h1 = jnp.maximum(h1, 0.0)

    # output layer: padded w2 columns are zero, so padded logits equal the
    # baked -1e30 bias -> exp underflows to exactly 0 (lane-dense store).
    logits = jnp.dot(h1.astype(jnp.bfloat16), w2,
                     preferred_element_type=jnp.float32) + b2

    # Stable softmax with exact f32 division (approx reciprocal broke the
    # row-sum-to-1 check).
    m = jnp.max(logits, axis=-1, keepdims=True)
    e = jnp.exp(logits - m)
    denom = jnp.sum(e, axis=-1, keepdims=True)
    o_ref[...] = (e / denom).astype(o_ref.dtype)


def pack_weights(w0, w1, w2):
    """Pack all weights into one zero-padded bf16 slab (W_ROWS, LANE)."""
    w = jnp.zeros((W_ROWS, LANE), jnp.bfloat16)
    w = w.at[W0_ROW:W0_ROW + w0.shape[0], :w0.shape[1]].set(w0.astype(jnp.bfloat16))
    w = w.at[W1_ROW:W1_ROW + w1.shape[0], :w1.shape[1]].set(w1.astype(jnp.bfloat16))
    w = w.at[W2_ROW:W2_ROW + w2.shape[0], :w2.shape[1]].set(w2.astype(jnp.bfloat16))
    return w


def pack_biases(b0, b1, b2):
    """Pack biases into an f32 slab; bake the softmax lane mask into b2's row."""
    b = jnp.zeros((B_ROWS, LANE), jnp.float32)
    b = b.at[0, :b0.shape[0]].set(b0)
    b = b.at[1, :b1.shape[0]].set(b1)
    row2 = jnp.full((LANE,), NEG_BIG, jnp.float32).at[:b2.shape[0]].set(b2)
    b = b.at[2, :].set(row2)
    return b


def pad_x(x):
    """Zero-pad features to LANE and cast to bf16 in the wrapper (not in-kernel)."""
    B, F = x.shape
    return jnp.zeros((B, LANE), jnp.bfloat16).at[:, :F].set(x.astype(jnp.bfloat16))


def mlp_forward(x_padded, w_slab, b_slab):
    B = x_padded.shape[0]
    full = lambda shape: pl.BlockSpec(shape, lambda: (0,) * len(shape))
    cost = pl.CostEstimate(
        flops=2 * B * LANE * LANE * 3,
        transcendentals=B * LANE,
        bytes_accessed=(x_padded.size * 2 + w_slab.size * 2
                        + b_slab.size * 4 + B * LANE * 4),
    )
    out_padded = pl.pallas_call(
        mlp_kernel,
        out_shape=jax.ShapeDtypeStruct((B, LANE), jnp.float32),
        grid=(),  # tiny model: single program, everything resident in VMEM
        in_specs=[full(x_padded.shape), full(w_slab.shape), full(b_slab.shape)],
        out_specs=full((B, LANE)),
        cost_estimate=cost,
    )(x_padded, w_slab, b_slab)
    return out_padded[:, :OUT_DIM]


def init_linear(key, fan_in, fan_out):
    # PyTorch nn.Linear default init: U(-1/sqrt(fan_in), 1/sqrt(fan_in))
    kw, kb = jax.random.split(key)
    bound = 1.0 / jnp.sqrt(fan_in)
    w = jax.random.uniform(kw, (fan_in, fan_out), jnp.float32, -bound, bound)
    b = jax.random.uniform(kb, (fan_out,), jnp.float32, -bound, bound)
    return w, b


def reference(x, w0, b0, w1, b1, w2, b2):
    h0 = jnp.maximum(x @ w0 + b0, 0.0)
    h1 = jnp.maximum(h0 @ w1 + b1, 0.0)
    return jax.nn.softmax(h1 @ w2 + b2, axis=-1)


if __name__ == "__main__":
    key = jax.random.PRNGKey(0)
    k_x, k0, k1, k2 = jax.random.split(key, 4)

    batch, in_feat, num_units = 8, 20, 10
    x = jax.random.normal(k_x, (batch, in_feat), jnp.float32)

    w0, b0 = init_linear(k0, in_feat, num_units)   # dense0: 20 -> 10
    w1, b1 = init_linear(k1, num_units, 10)        # dense1: 10 -> 10
    w2, b2 = init_linear(k2, 10, 2)                # output: 10 -> 2

    w_slab = pack_weights(w0, w1, w2)
    b_slab = pack_biases(b0, b1, b2)
    x_pad = pad_x(x)

    out = mlp_forward(x_pad, w_slab, b_slab)
    out = jax.block_until_ready(out)

    # sanity checks
    assert out.shape == (batch, OUT_DIM)
    # exact f32 division -> rows sum to 1 up to f32 rounding
    assert jnp.allclose(jnp.sum(out, axis=-1), 1.0, atol=1e-4)
    ref = reference(x, w0, b0, w1, b1, w2, b2)
    assert jnp.allclose(out, ref, atol=3e-2), jnp.max(jnp.abs(out - ref))
    print("KERNEL_OK")
</pallas_src>

<mosaic_0001>
module attributes {stable_mosaic.version = 11 : i64} {
  func.func @mlp_kernel(%arg0: memref<8x128xbf16, #tpu.memory_space<vmem>>, %arg1: memref<384x128xbf16, #tpu.memory_space<vmem>>, %arg2: memref<8x128xf32, #tpu.memory_space<vmem>>, %arg3: memref<8x128xf32, #tpu.memory_space<vmem>>) attributes {dimension_semantics = [], scalar_prefetch = 0 : i64, scratch_operands = 0 : i64, tpu.core_type = #tpu.core_type<tc>} {
    %c0 = arith.constant 0 : index
    %c0_0 = arith.constant 0 : index
    %0 = vector.load %arg0[%c0, %c0_0] : memref<8x128xbf16, #tpu.memory_space<vmem>>, vector<8x128xbf16>
    %c0_1 = arith.constant 0 : index
    %c0_2 = arith.constant 0 : index
    %1 = vector.load %arg1[%c0_1, %c0_2] : memref<384x128xbf16, #tpu.memory_space<vmem>>, vector<128x128xbf16>
    %c128 = arith.constant 128 : index
    %c0_3 = arith.constant 0 : index
    %2 = vector.load %arg1[%c128, %c0_3] : memref<384x128xbf16, #tpu.memory_space<vmem>>, vector<128x128xbf16>
    %c256 = arith.constant 256 : index
    %c0_4 = arith.constant 0 : index
    %3 = vector.load %arg1[%c256, %c0_4] : memref<384x128xbf16, #tpu.memory_space<vmem>>, vector<128x128xbf16>
    %c0_5 = arith.constant 0 : index
    %c0_6 = arith.constant 0 : index
    %4 = vector.load %arg2[%c0_5, %c0_6] : memref<8x128xf32, #tpu.memory_space<vmem>>, vector<1x128xf32>
    %c1 = arith.constant 1 : index
    %c0_7 = arith.constant 0 : index
    %5 = vector.load %arg2[%c1, %c0_7] : memref<8x128xf32, #tpu.memory_space<vmem>>, vector<1x128xf32>
    %c2 = arith.constant 2 : index
    %c0_8 = arith.constant 0 : index
    %6 = vector.load %arg2[%c2, %c0_8] : memref<8x128xf32, #tpu.memory_space<vmem>>, vector<1x128xf32>
    %cst = arith.constant dense<0.000000e+00> : vector<8x128xf32>
    %7 = tpu.matmul %0, %1, %cst {dimension_numbers = #tpu.dot_dimension_numbers<[1], [0], [0], [1], [0, 0, 1, 1], [], []>} : vector<8x128xbf16>, vector<128x128xbf16>, vector<8x128xf32> -> vector<8x128xf32>
    %8 = vector.broadcast %4 : vector<1x128xf32> to vector<8x128xf32>
    %9 = arith.addf %7, %8 : vector<8x128xf32>
    %cst_9 = arith.constant 0.000000e+00 : f32
    %10 = vector.broadcast %cst_9 : f32 to vector<8x128xf32>
    %11 = arith.maximumf %9, %10 : vector<8x128xf32>
    %12 = arith.truncf %11 : vector<8x128xf32> to vector<8x128xbf16>
    %cst_10 = arith.constant dense<0.000000e+00> : vector<8x128xf32>
    %13 = tpu.matmul %12, %2, %cst_10 {dimension_numbers = #tpu.dot_dimension_numbers<[1], [0], [0], [1], [0, 0, 1, 1], [], []>} : vector<8x128xbf16>, vector<128x128xbf16>, vector<8x128xf32> -> vector<8x128xf32>
    %14 = vector.broadcast %5 : vector<1x128xf32> to vector<8x128xf32>
    %15 = arith.addf %13, %14 : vector<8x128xf32>
    %cst_11 = arith.constant 0.000000e+00 : f32
    %16 = vector.broadcast %cst_11 : f32 to vector<8x128xf32>
    %17 = arith.maximumf %15, %16 : vector<8x128xf32>
    %18 = arith.truncf %17 : vector<8x128xf32> to vector<8x128xbf16>
    %cst_12 = arith.constant dense<0.000000e+00> : vector<8x128xf32>
    %19 = tpu.matmul %18, %3, %cst_12 {dimension_numbers = #tpu.dot_dimension_numbers<[1], [0], [0], [1], [0, 0, 1, 1], [], []>} : vector<8x128xbf16>, vector<128x128xbf16>, vector<8x128xf32> -> vector<8x128xf32>
    %20 = vector.broadcast %6 : vector<1x128xf32> to vector<8x128xf32>
    %21 = arith.addf %19, %20 : vector<8x128xf32>
    %cst_13 = arith.constant dense<0xFF800000> : vector<8xf32>
    %22 = vector.multi_reduction <maximumf>, %21, %cst_13 [1] : vector<8x128xf32> to vector<8xf32>
    %23 = vector.shape_cast %22 : vector<8xf32> to vector<8x1xf32>
    %24 = vector.broadcast %23 : vector<8x1xf32> to vector<8x128xf32>
    %25 = arith.subf %21, %24 : vector<8x128xf32>
    %26 = math.exp %25 : vector<8x128xf32>
    %cst_14 = arith.constant dense<0.000000e+00> : vector<8xf32>
    %27 = vector.multi_reduction <add>, %26, %cst_14 [1] : vector<8x128xf32> to vector<8xf32>
    %28 = vector.shape_cast %27 : vector<8xf32> to vector<8x1xf32>
    %29 = vector.broadcast %28 : vector<8x1xf32> to vector<8x128xf32>
    %30 = arith.divf %26, %29 : vector<8x128xf32>
    %c0_15 = arith.constant 0 : index
    %c0_16 = arith.constant 0 : index
    %31 = vector.load %arg3[%c0_15, %c0_16] : memref<8x128xf32, #tpu.memory_space<vmem>>, vector<8x128xf32>
    tpu.vector_store %arg3[%c0_15, %c0_16], %30 {strides = array<i32>} : memref<8x128xf32, #tpu.memory_space<vmem>>, vector<8x128xf32>,
    return
  }
}

</mosaic_0001>

<bundles_post_ra>
// kernel: tpu_custom_call.1
= control target key start
LH: loop header
LB: loop body
LE: loop exit
PB: predicated region body
PF: predicated region fallthrough
CT: control target
= control target key end

     0   :  { %8 = vsyncpa [#allocation3], 0  ;;  %s761_s0 = inlined_call_operand.hbm [shape: bf16[8,128], index: 0, kind: input, shape index: {}]   ;;  %s762_s1 = inlined_call_operand.hbm [shape: bf16[384,128], index: 1, kind: input, shape index: {}]   ;;  %s763_s2 = inlined_call_operand.hbm [shape: f32[8,128], index: 2, kind: input, shape index: {}]   ;;  %s764_s3 = inlined_call_operand.hbm [shape: f32[8,128], index: 3, kind: output, shape index: {}]  }
   0x1   :  { %9 = vsyncpa [#allocation6], 0 }
   0x2   :  { %10 = vsyncpa [#allocation4], 0  ;;  %s655_s12 = smov [#allocation5]   ;;  %s561_s16 = scalar_lea.hbm %s762_s1, 3072 }
   0x3   :  { %s26_s13 = sshll.u32 %s655_s12, 4  ;;  %p562_p0 = scmp.ne.s32.totalorder %s762_s1, %s561_s16  ;;  %s27_s13 = int_to_ptr.vmem [resolvable:$true] %s26_s13 }
   0x4   :  { %p565_p1 = scmp.lt.u32.totalorder %s561_s16, %s762_s1 }
   0x6   :  { %p567_p2 = pnand %p565_p1, %p562_p0 }
   0x8   :  { %570 = shalt.err (!%p567_p2)
}
   0x9   :  { %s571_s21 = scalar_lea.vmem %s27_s13, 3072  ;;  %p576_p4 = scmp.lt.s32.totalorder %s27_s13, %s27_s13 }
   0xa   :  { %p572_p3 = scmp.ne.s32.totalorder %s27_s13, %s571_s21  ;;  %p577_p5 = scmp.lt.s32.totalorder %s571_s21, %s571_s21 }
   0xc   :  { %p578_p6 = por %p577_p5, %p576_p4 }
   0xe   :  { %p579_p7 = pnand %p578_p6, %p572_p3 }
  0x10   :  { %582 = shalt.err (!%p579_p7)
}
  0x11   :  { %s656_s22 = smov 64   ;;  %s657_s23 = smov 4  }
  0x12   :  { %32 = dma.hbm_to_vmem [thread:$0]  %s762_s1, 3072, %s27_s13, [#allocation6], %s656_s22, %s656_s22, %s657_s23  }
  0x13   :  { %s658_s26 = smov [#allocation2]   ;;  %s659_s28 = smov [#allocation7]  }
  0x14   :  { %s17_s27 = sshll.u32 %s658_s26, 4  ;;  %s39_s29 = sshll.u32 %s659_s28, 4  ;;  %s18_s27 = int_to_ptr.vmem [resolvable:$true] %s17_s27  ;;  %s40_s29 = int_to_ptr.vmem [resolvable:$true] %s39_s29 }
  0x15   :  { %s583_s5 = scalar_lea.hbm %s761_s0, 64 }
  0x16   :  { %p584_p8 = scmp.ne.s32.totalorder %s761_s0, %s583_s5  ;;  %p587_p9 = scmp.lt.u32.totalorder %s583_s5, %s761_s0 }
  0x18   :  { %p589_p10 = pnand %p587_p9, %p584_p8 }
  0x1a   :  { %592 = shalt.err (!%p589_p10)
}
  0x1b   :  { %s593_s1 = scalar_lea.vmem %s18_s27, 64  ;;  %p598_p12 = scmp.lt.s32.totalorder %s18_s27, %s18_s27 }
  0x1c   :  { %p594_p11 = scmp.ne.s32.totalorder %s18_s27, %s593_s1  ;;  %p599_p13 = scmp.lt.s32.totalorder %s593_s1, %s593_s1 }
  0x1e   :  { %p600_p0 = por %p599_p13, %p598_p12 }
  0x20   :  { %p601_p1 = pnand %p600_p0, %p594_p11 }
  0x22   :  { %604 = shalt.err (!%p601_p1)
}
  0x23   :  { %20 = dma.hbm_to_vmem [thread:$0]  %s761_s0, 64, %s18_s27, [#allocation3]  }
  0x24   :  { %s605_s14 = scalar_lea.hbm %s763_s2, 128 }
  0x25   :  { %p606_p2 = scmp.ne.s32.totalorder %s763_s2, %s605_s14  ;;  %p609_p3 = scmp.lt.u32.totalorder %s605_s14, %s763_s2 }
  0x27   :  { %p611_p4 = pnand %p609_p3, %p606_p2 }
  0x29   :  { %614 = shalt.err (!%p611_p4)
}
  0x2a   :  { %s615_s19 = scalar_lea.vmem %s40_s29, 128  ;;  %p620_p6 = scmp.lt.s32.totalorder %s40_s29, %s40_s29 }
  0x2b   :  { %p616_p5 = scmp.ne.s32.totalorder %s40_s29, %s615_s19  ;;  %p621_p7 = scmp.lt.s32.totalorder %s615_s19, %s615_s19 }
  0x2d   :  { %p622_p8 = por %p621_p7, %p620_p6 }
  0x2f   :  { %p623_p9 = pnand %p622_p8, %p616_p5 }
  0x31   :  { %626 = shalt.err (!%p623_p9)
}
  0x32   :  { %42 = dma.hbm_to_vmem [thread:$0]  %s763_s2, 128, %s40_s29, [#allocation6]  }
  0x33   :  { %649 = dma.done.wait [#allocation3], 64  }
  0x34   :  { %650 = vsyncadd [#allocation3], 4294967232 }
  0x35   :  { %651 = dma.done.wait [#allocation6], 3200  }
  0x36   :  { %652 = vsyncadd [#allocation6], 4294964096  ;;  %v660_v0 = vmov 0.0   ;;  %vm661_vm0 = vmmov 0   ;;  %v533_v1 = vld [vmem:[#allocation5] sm:$0xff]   ;;  %v534_v2 = vld [vmem:[#allocation5 + $0x8] sm:$0xff]  }
  0x37   :  { %465 = vmatprep.subr.bf16.mxu0 %v660_v0  ;;  %481 = vmatprep.mubr.msk.bf16.mxu0 %vm661_vm0, %v660_v0  ;;  %v535_v3 = vld [vmem:[#allocation5 + $0x10] sm:$0xff]   ;;  %v541_v4 = vld [vmem:[#allocation5 + $0x40] sm:$0xff]   ;;  %v536_v5 = vld [vmem:[#allocation5 + $0x18] sm:$0xff]   ;;  %s662_s2 = smov [#allocation8]  }
  0x38   :  { %485 = vmatprep.subr.bf16.mxu1 %v660_v0  ;;  %501 = vmatprep.mubr.msk.bf16.mxu1 %vm661_vm0, %v660_v0  ;;  %v542_v6 = vld [vmem:[#allocation5 + $0x48] sm:$0xff]   ;;  %v537_v7 = vld [vmem:[#allocation5 + $0x20] sm:$0xff]   ;;  %v543_v8 = vld [vmem:[#allocation5 + $0x50] sm:$0xff]   ;;  %s401_s21 = sshll.u32 %s662_s2, 4  ;;  %s402_s21 = int_to_ptr.vmem [resolvable:$true] %s401_s21 }
  0x39   :  { %466 = vmatpush3.bf16.msra.mxu0 %v533_v1  ;;  %486 = vmatpush3.bf16.msra.mxu1 %v541_v4  ;;  %v538_v9 = vld [vmem:[#allocation5 + $0x28] sm:$0xff]   ;;  %v544_v10 = vld [vmem:[#allocation5 + $0x58] sm:$0xff]   ;;  %v539_v11 = vld [vmem:[#allocation5 + $0x30] sm:$0xff]   ;;  %s627_s22 = scalar_lea.vmem %s402_s21, 128  ;;  %p632_p11 = scmp.lt.s32.totalorder %s402_s21, %s402_s21 }
  0x3a   :  { %467 = vmatprep.subr.bf16.mxu0 %v660_v0  ;;  %487 = vmatprep.subr.bf16.mxu1 %v660_v0  ;;  %v545_v12 = vld [vmem:[#allocation5 + $0x60] sm:$0xff]   ;;  %v540_v13 = vld [vmem:[#allocation5 + $0x38] sm:$0xff]   ;;  %v546_v14 = vld [vmem:[#allocation5 + $0x68] sm:$0xff]   ;;  %p628_p10 = scmp.ne.s32.totalorder %s402_s21, %s627_s22  ;;  %p633_p12 = scmp.lt.s32.totalorder %s627_s22, %s627_s22 }
  0x3b   :  { %v53_v15 = vld [vmem:[#allocation2] sm:$0xf]  ;;  %v547_v16 = vld [vmem:[#allocation5 + $0x70] sm:$0xff]   ;;  %v549_v18 = vld [vmem:[#allocation5 + $0x80] sm:$0xff]  }
  0x3c   :  { %v548_v17 = vld [vmem:[#allocation5 + $0x78] sm:$0xff]   ;;  %v550_v19 = vld [vmem:[#allocation5 + $0x88] sm:$0xff]   ;;  %v551_v20 = vld [vmem:[#allocation5 + $0x90] sm:$0xff]   ;;  %p634_p13 = por %p633_p12, %p632_p11 }
  0x3d   :  { %468 = vmatpush3.bf16.msra.mxu0 %v534_v2  ;;  %488 = vmatpush3.bf16.msra.mxu1 %v542_v6  ;;  %v552_v21 = vld [vmem:[#allocation5 + $0x98] sm:$0xff]   ;;  %v553_v22 = vld [vmem:[#allocation5 + $0xa0] sm:$0xff]   ;;  %v554_v23 = vld [vmem:[#allocation5 + $0xa8] sm:$0xff]  }
  0x3e   :  { %469 = vmatprep.subr.bf16.mxu0 %v660_v0  ;;  %489 = vmatprep.subr.bf16.mxu1 %v660_v0  ;;  %v411_v24 = vld [vmem:[#allocation7] ss:$0 sm:$0xff]  ;;  %v555_v32 = vld [vmem:[#allocation5 + $0xb0] sm:$0xff]   ;;  %v556_v33 = vld [vmem:[#allocation5 + $0xb8] sm:$0xff]   ;;  %p635_p0 = pnand %p634_p13, %p628_p10 }
  0x3f   :  { %v420_v34 = vld [vmem:[#allocation7 + $0x1] ss:$0 sm:$0xff]  ;;  %v429_v42 = vld [vmem:[#allocation7 + $0x2] ss:$0 sm:$0xff] }
  0x41   :  { %470 = vmatpush3.bf16.msra.mxu0 %v535_v3  ;;  %490 = vmatpush3.bf16.msra.mxu1 %v543_v8 }
  0x42   :  { %471 = vmatprep.subr.bf16.mxu0 %v660_v0  ;;  %491 = vmatprep.subr.bf16.mxu1 %v660_v0 }
  0x45   :  { %472 = vmatpush3.bf16.msra.mxu0 %v536_v5  ;;  %492 = vmatpush3.bf16.msra.mxu1 %v544_v10 }
  0x46   :  { %473 = vmatprep.subr.bf16.mxu0 %v660_v0  ;;  %493 = vmatprep.subr.bf16.mxu1 %v660_v0 }
  0x49   :  { %474 = vmatpush3.bf16.msra.mxu0 %v537_v7  ;;  %494 = vmatpush3.bf16.msra.mxu1 %v545_v12 }
  0x4a   :  { %475 = vmatprep.subr.bf16.mxu0 %v660_v0  ;;  %495 = vmatprep.subr.bf16.mxu1 %v660_v0 }
  0x4d   :  { %476 = vmatpush3.bf16.msra.mxu0 %v538_v9  ;;  %496 = vmatpush3.bf16.msra.mxu1 %v546_v14 }
  0x4e   :  { %477 = vmatprep.subr.bf16.mxu0 %v660_v0  ;;  %497 = vmatprep.subr.bf16.mxu1 %v660_v0 }
  0x51   :  { %478 = vmatpush3.bf16.msra.mxu0 %v539_v11  ;;  %498 = vmatpush3.bf16.msra.mxu1 %v547_v16 }
  0x52   :  { %479 = vmatprep.subr.bf16.mxu0 %v660_v0  ;;  %499 = vmatprep.subr.bf16.mxu1 %v660_v0 }
  0x55   :  { %480 = vmatpush3.bf16.msra.mxu0 %v540_v13  ;;  %500 = vmatpush3.bf16.msra.mxu1 %v548_v17 }
  0x56   :  { %505 = vmatprep.subr.bf16.mxu0 %v660_v0 }
  0x58   :  { %482 = vmatmul.mubr.bf16.vlgmr.msra.gmra.mrb[0].mxu0 %v53_v15 }
  0x59   :  { %521 = vmatprep.mubr.msk.bf16.mxu0 %vm661_vm0, %v660_v0  ;;  %506 = vmatpush3.bf16.msra.mxu0 %v549_v18 }
  0x5a   :  { %507 = vmatprep.subr.bf16.mxu0 %v660_v0 }
  0x5d   :  { %508 = vmatpush3.bf16.msra.mxu0 %v550_v19 }
  0x5e   :  { %509 = vmatprep.subr.bf16.mxu0 %v660_v0 }
  0x61   :  { %510 = vmatpush3.bf16.msra.mxu0 %v551_v20 }
  0x62   :  { %511 = vmatprep.subr.bf16.mxu0 %v660_v0 }
  0x65   :  { %512 = vmatpush3.bf16.msra.mxu0 %v552_v21 }
  0x66   :  { %513 = vmatprep.subr.bf16.mxu0 %v660_v0 }
  0x69   :  { %514 = vmatpush3.bf16.msra.mxu0 %v553_v22 }
  0x6a   :  { %515 = vmatprep.subr.bf16.mxu0 %v660_v0 }
  0x6d   :  { %516 = vmatpush3.bf16.msra.mxu0 %v554_v23 }
  0x6e   :  { %517 = vmatprep.subr.bf16.mxu0 %v660_v0 }
  0x71   :  { %518 = vmatpush3.bf16.msra.mxu0 %v555_v32 }
  0x72   :  { %519 = vmatprep.subr.bf16.mxu0 %v660_v0 }
  0x75   :  { %520 = vmatpush3.bf16.msra.mxu0 %v556_v33 }
 0x12b   :  { %v191_v25 = vpop.f32.mrb[0].mxu0 }
 0x12c   :  { %v192_v26 = vadd.f32 %v411_v24, %v191_v25  ;;  %v483_v27 = vpop.f32.mrb[1].mxu0 }
 0x12d   :  { %v194_v28 = vpop.f32.mrb[2].mxu0 }
 0x12e   :  { %v197_v29 = vmax.f32 %v192_v26, 0.0  ;;  %v484_v30 = vpop.f32.mrb[3].mxu0 }
 0x130   :  { %v198_v31 = vpack.c.bf16 %v197_v29, %v197_v29 }
 0x132   :  { %502 = vmatmul.mubr.bf16.vlgmr.msra.gmra.mrb[0].mxu1 %v198_v31 }
 0x205   :  { %v285_v35 = vpop.f32.mrb[0].mxu1 }
 0x206   :  { %v286_v36 = vadd.f32 %v420_v34, %v285_v35  ;;  %v503_v37 = vpop.f32.mrb[1].mxu1 }
 0x207   :  { %v288_v38 = vpop.f32.mrb[2].mxu1 }
 0x208   :  { %v291_v39 = vmax.f32 %v286_v36, 0.0  ;;  %v504_v40 = vpop.f32.mrb[3].mxu1 }
 0x20a   :  { %v292_v41 = vpack.c.bf16 %v291_v39, %v291_v39 }
 0x20c   :  { %522 = vmatmul.mubr.bf16.vlgmr.msra.gmra.mrb[4].mxu0 %v292_v41 }
 0x2df   :  { %v379_v43 = vpop.f32.mrb[4].mxu0 }
 0x2e0   :  { %v380_v44 = vadd.f32 %v429_v42, %v379_v43  ;;  %v523_v45 = vpop.f32.mrb[5].mxu0 }
 0x2e1   :  { %v382_v46 = vpop.f32.mrb[6].mxu0 }
 0x2e2   :  { %385 = vmax.xlane.f32.xlu0 %v380_v44  ;;  %v524_v47 = vpop.f32.mrb[7].mxu0 }
 0x36f   :  { %v386_v48 = vpop.xlane.xlu0 %385 }
 0x370   :  { %v387_v49 = vsub.f32 %v380_v44, %v386_v48 }
 0x372   :  { %v388_v50 = vmul.f32 1.442695, %v387_v49 }
 0x374   :  { %557 = vpow2.f32 %v388_v50 }
 0x37e   :  { %v558_v51 = vpop.eup %557 }
 0x37f   :  { %390 = vadd.xlane.f32.xlu0 %v558_v51 }
 0x40c   :  { %v391_v52 = vpop.xlane.xlu0 %390 }
 0x40d   :  { %559 = vrcp.f32 %v391_v52 }
 0x417   :  { %v560_v53 = vpop.eup %559 }
 0x418   :  { %v393_v54 = vmul.f32 %v560_v53, %v558_v51 }
 0x41a   :  { %394 = vst [vmem:[#allocation8] sm:$0xff] %v393_v54 }
 0x41b   :  { %638 = shalt.err (!%p635_p0)
}
 0x41c   :  { %s639_s25 = scalar_lea.hbm %s764_s3, 128 }
 0x41d   :  { %p640_p1 = scmp.ne.s32.totalorder %s764_s3, %s639_s25  ;;  %p643_p2 = scmp.lt.u32.totalorder %s639_s25, %s764_s3 }
 0x41f   :  { %p645_p3 = pnand %p643_p2, %p640_p1 }
 0x421   :  { %648 = shalt.err (!%p645_p3)
}
 0x422   :  { %404 = dma.vmem_to_hbm [thread:$0]  %s402_s21, 128, %s764_s3, [#allocation4]  }
 0x423   :  { %653 = dma.done.wait [#allocation4], 128  }
 0x424   :  { %654 = vsyncadd [#allocation4], 4294967168 }
 0x425   :  { %408 = vsyncpa [#allocation3], 1 }
 0x426   :  { %409 = vsyncpa [#allocation6], 1 }
 0x427   :  { %410 = vsyncpa [#allocation4], 1 }

</bundles_post_ra>
